<compile_context>
chip_gen: v7x
topology: tpu7x:2x2x1
jax: 0.10.0
libtpu: 0.0.40
codegen_flags: <defaults>
</compile_context>

<pallas_src>
import jax
import jax.numpy as jnp
import numpy as np
from jax.experimental import pallas as pl
from jax.experimental.pallas import tpu as pltpu


def encoder_linear_kernel(
        src_u_ref, src_h_ref,            # resident (Na,HP)/(Ns,HP) bf16 source projections
        ps_h_ref, scal_ref,              # row tiles: (TM,H+2) bf16, (TM,8) f32
        adj_a_ref, adj_s_ref,            # row tiles: (TM,Na)/(TM,Ns) bf16
        w_small_ref,                     # resident (16,HP) f32 packed small weights
        w_upd_hp_ref, w_upd_su_ref, w_upd_sh_ref,   # resident updater weights bf16
        out_ref):
    f32, bf16 = jnp.float32, jnp.bfloat16

    scal = scal_ref[...]                                   # (TM, 8) f32
    pos_x, pos_y = scal[:, 0:1], scal[:, 1:2]
    deg_a, dsum_a = scal[:, 2:3], scal[:, 3:4]
    deg_s, dsum_s = scal[:, 4:5], scal[:, 5:6]

    wsm = w_small_ref[...]                                 # (16, HP) f32
    # rows: 0 u2h_dst_x, 1 u2h_dst_y, 2 u2h_dis, 3 u2h_bias,
    #       4 h2h_dst_x, 5 h2h_dst_y, 6 h2h_dis, 7 h2h_bias, 8 upd_bias

    # ---------------- a2s edges: u2h_enc + fn.sum ----------------
    agg_u = jnp.dot(adj_a_ref[...], src_u_ref[...],
                    preferred_element_type=f32)            # (TM, HP)
    dst_u = pos_x * wsm[0:1] + pos_y * wsm[1:2] + wsm[3:4]  # VPU broadcast FMAs
    sum_u = agg_u + deg_a * dst_u + dsum_a * wsm[2:3]       # (TM, HP) f32

    # ---------------- s2s edges: h2h_enc + fn.mean ----------------
    agg_h = jnp.dot(adj_s_ref[...], src_h_ref[...],
                    preferred_element_type=f32)            # (TM, HP)
    dst_h = pos_x * wsm[4:5] + pos_y * wsm[5:6] + wsm[7:8]
    inv_deg = jnp.where(deg_s > 0, pl.reciprocal(deg_s, approx=True), 0.0)
    sum_h = (agg_h + deg_s * dst_h + dsum_s * wsm[6:7]) * inv_deg

    # ---------------- h_updater ----------------
    out = (jnp.dot(ps_h_ref[...], w_upd_hp_ref[...], preferred_element_type=f32)
           + jnp.dot(sum_u.astype(bf16), w_upd_su_ref[...], preferred_element_type=f32)
           + jnp.dot(sum_h.astype(bf16), w_upd_sh_ref[...], preferred_element_type=f32)
           + wsm[8:9])
    out_ref[...] = out.astype(out_ref.dtype)


def _vmem_limit_bytes():
    """Generation-aware scoped-VMEM limit (v5e/v6e: ~96 MiB, v7x: ~48 MiB)."""
    phys = 64 * 1024 * 1024
    try:
        info = pltpu.get_tpu_info()
        phys = int(getattr(info, "vmem_capacity_bytes", phys) or phys)
    except Exception:
        pass
    return min(int(phys * 3 // 4), 100 * 1024 * 1024)


def _pick_row_tile(Ns, Na, H, HP, budget_bytes):
    """Largest Ns-dividing row tile whose double-buffered footprint fits the budget."""
    resident = (Na * HP * 2 + Ns * HP * 2          # src projections (bf16)
                + 16 * HP * 4                      # small weights (f32)
                + (H + 2) * HP * 2 + 2 * HP * HP * 2)  # updater weights (bf16)
    ladder = [t for t in (1024, 512, 256, 128, 64, 32, 16, 8) if t <= Ns and Ns % t == 0]
    if not ladder:
        ladder = [Ns]
    for t in ladder:
        stream = t * (Na * 2 + Ns * 2              # adjacency row tiles (bf16)
                      + (H + 2) * 2                # ps_h row tile (bf16)
                      + 8 * 4                      # scal columns (f32)
                      + HP * 4)                    # output tile (f32)
        if 2 * (resident + stream) <= budget_bytes:
            return t
    return ladder[-1]


def encoder_linear_forward(h, u, pos_s, pos_a, adj_a2s, dis_a2s, adj_s2s, dis_s2s, params):
    Ns, H = h.shape
    Na, U = u.shape
    HP = 128 * pl.cdiv(H, 128)                  # lane-dense hidden width
    f32, bf16 = jnp.float32, jnp.bfloat16

    vmem_limit = _vmem_limit_bytes()
    TM = _pick_row_tile(Ns, Na, H, HP, vmem_limit - 8 * 1024 * 1024)
    ntiles = Ns // TM

    # ---- XLA-side one-shot layout plumbing / hoisted work ----
    W1, W2, W3 = params["W_u2h"], params["W_h2h"], params["W_upd"]

    def pad_cols(x):
        return jnp.pad(x, ((0, 0), (0, HP - x.shape[-1])))

    # Hoisted source projections (one matmul each, f32 then bf16 for the MXU operand).
    w_u2h_src = pad_cols(jnp.concatenate([W1[:, 0:2], W1[:, 5:]], axis=1).T)   # (U+2, HP)
    w_h2h_src = pad_cols(jnp.concatenate([W2[:, 0:2], W2[:, 5:]], axis=1).T)   # (H+2, HP)
    pa_u_f = jnp.concatenate([pos_a, u], axis=-1).astype(f32)                  # (Na, U+2)
    ps_h_f = jnp.concatenate([pos_s, h], axis=-1).astype(f32)                  # (Ns, H+2)
    src_u_proj = jnp.dot(pa_u_f, w_u2h_src).astype(bf16)                       # (Na, HP)
    src_h_proj = jnp.dot(ps_h_f, w_h2h_src).astype(bf16)                       # (Ns, HP)
    ps_h = ps_h_f.astype(bf16)                                                 # updater operand

    # Per-destination degree / masked-distance sums (fused XLA pass; dis never
    # enters the kernel) + positions, packed into one narrow f32 column block.
    deg_a = jnp.sum(adj_a2s, axis=-1, keepdims=True)
    dsum_a = jnp.sum(adj_a2s * dis_a2s, axis=-1, keepdims=True)
    deg_s = jnp.sum(adj_s2s, axis=-1, keepdims=True)
    dsum_s = jnp.sum(adj_s2s * dis_s2s, axis=-1, keepdims=True)
    scal = jnp.concatenate([pos_s[:, 0:1], pos_s[:, 1:2], deg_a, dsum_a, deg_s, dsum_s,
                            jnp.zeros((Ns, 2), f32)], axis=-1).astype(f32)     # (Ns, 8)

    adj_a_b = adj_a2s.astype(bf16)            # 0/1 exact in bf16
    adj_s_b = adj_s2s.astype(bf16)

    # Packed small weights (dst-pos rows, dis rows, biases): one resident (16, HP) f32.
    def row(x):
        x = x.reshape(1, -1)
        return jnp.pad(x, ((0, 0), (0, HP - x.shape[-1]))).astype(f32)

    w_small = jnp.concatenate([
        row(W1[:, 2]), row(W1[:, 3]), row(W1[:, 4]), row(params["b_u2h"]),
        row(W2[:, 2]), row(W2[:, 3]), row(W2[:, 4]), row(params["b_h2h"]),
        row(params["b_upd"]),
        jnp.zeros((7, HP), f32),
    ], axis=0)                                                                  # (16, HP)

    # Updater weights: [pos|h], sum_u, sum_h blocks (zero-padded to HP in/out).
    w_upd_hp = pad_cols(jnp.concatenate([W3[:, 3 * H:3 * H + 2], W3[:, 0:H]],
                                        axis=1).T).astype(bf16)                # (H+2, HP)
    w_upd_su = jnp.pad(W3[:, H:2 * H].T, ((0, HP - H), (0, HP - H))).astype(bf16)
    w_upd_sh = jnp.pad(W3[:, 2 * H:3 * H].T, ((0, HP - H), (0, HP - H))).astype(bf16)

    args = (src_u_proj, src_h_proj, ps_h, scal, adj_a_b, adj_s_b,
            w_small, w_upd_hp, w_upd_su, w_upd_sh)

    def full(shape):
        return pl.BlockSpec(shape, lambda i: (0, 0))

    def rows(width):
        return pl.BlockSpec((TM, width), lambda i: (i, 0))

    in_specs = [
        full((Na, HP)),             # src_u_proj (resident)
        full((Ns, HP)),             # src_h_proj (resident)
        rows(H + 2),                # ps_h row tile
        rows(8),                    # scal row tile
        rows(Na),                   # adj_a2s row tile
        rows(Ns),                   # adj_s2s row tile
        full((16, HP)),             # packed small weights
        full((H + 2, HP)),          # w_upd_hp
        full((HP, HP)),             # w_upd_su
        full((HP, HP)),             # w_upd_sh
    ]

    flops = 2 * (Ns * Na * HP + Ns * Ns * HP            # adjacency aggregations
                 + Ns * (H + 2) * HP + 2 * Ns * HP * HP)  # updater dots
    bytes_accessed = int(sum(int(np.prod(a.shape)) * a.dtype.itemsize for a in args)
                         + Ns * HP * 4)

    out_padded = pl.pallas_call(
        encoder_linear_kernel,
        grid=(ntiles,),
        in_specs=in_specs,
        out_specs=pl.BlockSpec((TM, HP), lambda i: (i, 0)),
        out_shape=jax.ShapeDtypeStruct((Ns, HP), jnp.float32),
        compiler_params=pltpu.CompilerParams(
            dimension_semantics=("parallel",),
            vmem_limit_bytes=vmem_limit,
        ),
        cost_estimate=pl.CostEstimate(flops=flops, transcendentals=Ns,
                                      bytes_accessed=bytes_accessed),
    )(*args)
    return out_padded[:, :H]


def reference_forward(h, u, pos_s, pos_a, adj_a2s, dis_a2s, adj_s2s, dis_s2s, p):
    """Pure-JAX edge-explicit f32 reference replicating the DGL semantics."""
    Ns, H = h.shape
    Na, U = u.shape
    inp = jnp.concatenate([
        jnp.broadcast_to(pos_a[None, :, :], (Ns, Na, 2)),   # src pos
        jnp.broadcast_to(pos_s[:, None, :], (Ns, Na, 2)),   # dst pos
        dis_a2s[:, :, None],                                 # edge dis
        jnp.broadcast_to(u[None, :, :], (Ns, Na, U)),        # src u
    ], axis=-1)
    msg = inp @ p["W_u2h"].T + p["b_u2h"]
    sum_u = jnp.sum(msg * adj_a2s[:, :, None], axis=1)
    inp2 = jnp.concatenate([
        jnp.broadcast_to(pos_s[None, :, :], (Ns, Ns, 2)),
        jnp.broadcast_to(pos_s[:, None, :], (Ns, Ns, 2)),
        dis_s2s[:, :, None],
        jnp.broadcast_to(h[None, :, :], (Ns, Ns, H)),
    ], axis=-1)
    msg2 = inp2 @ p["W_h2h"].T + p["b_h2h"]
    sum_msg = jnp.sum(msg2 * adj_s2s[:, :, None], axis=1)
    deg = jnp.sum(adj_s2s, axis=1, keepdims=True)
    sum_h = jnp.where(deg > 0, sum_msg / jnp.maximum(deg, 1.0), 0.0)
    inp3 = jnp.concatenate([h, sum_u, sum_h, pos_s], axis=-1)
    return inp3 @ p["W_upd"].T + p["b_upd"]


if __name__ == "__main__":
    # Small synthetic graph: 8 state nodes, 8 action nodes, u_dim=4, hidden_dim=32.
    Ns, Na, U, H = 8, 8, 4, 32
    key = jax.random.PRNGKey(0)
    keys = jax.random.split(key, 12)

    h = jax.random.normal(keys[0], (Ns, H), jnp.float32)
    u = jax.random.normal(keys[1], (Na, U), jnp.float32)
    pos_s = jax.random.normal(keys[2], (Ns, 2), jnp.float32)
    pos_a = jax.random.normal(keys[3], (Na, 2), jnp.float32)
    adj_a2s = jax.random.bernoulli(keys[4], 0.5, (Ns, Na)).astype(jnp.float32)
    dis_a2s = jax.random.uniform(keys[5], (Ns, Na), jnp.float32) * adj_a2s
    adj_s2s = jax.random.bernoulli(keys[6], 0.5, (Ns, Ns)).astype(jnp.float32)
    dis_s2s = jax.random.uniform(keys[7], (Ns, Ns), jnp.float32) * adj_s2s

    # Deterministic parameter init (shapes from nn.Linear in __init__).
    params = {
        "W_u2h": 0.1 * jax.random.normal(keys[8], (H, U + 5), jnp.float32),
        "b_u2h": 0.1 * jax.random.normal(keys[9], (H,), jnp.float32),
        "W_h2h": 0.1 * jax.random.normal(keys[10], (H, H + 5), jnp.float32),
        "b_h2h": 0.1 * jax.random.normal(keys[11], (H,), jnp.float32),
        "W_upd": 0.1 * jax.random.normal(keys[8] + 1, (H, 3 * H + 2), jnp.float32),
        "b_upd": 0.1 * jax.random.normal(keys[9] + 1, (H,), jnp.float32),
    }

    out = encoder_linear_forward(h, u, pos_s, pos_a, adj_a2s, dis_a2s,
                                 adj_s2s, dis_s2s, params)
    out = jax.block_until_ready(out)

    ref = reference_forward(h, u, pos_s, pos_a, adj_a2s, dis_a2s, adj_s2s, dis_s2s, params)
    assert out.shape == (Ns, H)
    # bf16 MXU operands (f32 accumulation) -> validate at loosened tolerance.
    np.testing.assert_allclose(np.asarray(out), np.asarray(ref), rtol=5e-2, atol=5e-2)
    print("KERNEL_OK")
</pallas_src>

<mosaic_0001>
module attributes {stable_mosaic.version = 11 : i64} {
  func.func @encoder_linear_kernel(%arg0: i32, %arg1: memref<8x128xbf16, #tpu.memory_space<vmem>>, %arg2: memref<8x128xbf16, #tpu.memory_space<vmem>>, %arg3: memref<8x34xbf16, #tpu.memory_space<vmem>>, %arg4: memref<8x8xf32, #tpu.memory_space<vmem>>, %arg5: memref<8x8xbf16, #tpu.memory_space<vmem>>, %arg6: memref<8x8xbf16, #tpu.memory_space<vmem>>, %arg7: memref<16x128xf32, #tpu.memory_space<vmem>>, %arg8: memref<34x128xbf16, #tpu.memory_space<vmem>>, %arg9: memref<128x128xbf16, #tpu.memory_space<vmem>>, %arg10: memref<128x128xbf16, #tpu.memory_space<vmem>>, %arg11: memref<8x128xf32, #tpu.memory_space<vmem>>) attributes {dimension_semantics = [#tpu.dimension_semantics<parallel>], iteration_bounds = array<i64: 1>, scalar_prefetch = 0 : i64, scratch_operands = 0 : i64, tpu.core_type = #tpu.core_type<tc>, window_params = [{pipeline_mode = #tpu.pipeline_mode<synchronous>, transform_indices = @transform_0, window_bounds = array<i64: 8, 128>}, {pipeline_mode = #tpu.pipeline_mode<synchronous>, transform_indices = @transform_1, window_bounds = array<i64: 8, 128>}, {transform_indices = @transform_2, window_bounds = array<i64: 8, 34>}, {transform_indices = @transform_3, window_bounds = array<i64: 8, 8>}, {transform_indices = @transform_4, window_bounds = array<i64: 8, 8>}, {transform_indices = @transform_5, window_bounds = array<i64: 8, 8>}, {pipeline_mode = #tpu.pipeline_mode<synchronous>, transform_indices = @transform_6, window_bounds = array<i64: 16, 128>}, {pipeline_mode = #tpu.pipeline_mode<synchronous>, transform_indices = @transform_7, window_bounds = array<i64: 34, 128>}, {pipeline_mode = #tpu.pipeline_mode<synchronous>, transform_indices = @transform_8, window_bounds = array<i64: 128, 128>}, {pipeline_mode = #tpu.pipeline_mode<synchronous>, transform_indices = @transform_9, window_bounds = array<i64: 128, 128>}, {transform_indices = @transform_10, window_bounds = array<i64: 8, 128>}]} {
    %c0 = arith.constant 0 : index
    %c0_0 = arith.constant 0 : index
    %0 = vector.load %arg4[%c0, %c0_0] : memref<8x8xf32, #tpu.memory_space<vmem>>, vector<8x8xf32>
    %1 = vector.extract_strided_slice %0 {offsets = [0, 0], sizes = [8, 1], strides = [1, 1]} : vector<8x8xf32> to vector<8x1xf32>
    %2 = vector.extract_strided_slice %0 {offsets = [0, 1], sizes = [8, 1], strides = [1, 1]} : vector<8x8xf32> to vector<8x1xf32>
    %3 = vector.extract_strided_slice %0 {offsets = [0, 2], sizes = [8, 1], strides = [1, 1]} : vector<8x8xf32> to vector<8x1xf32>
    %4 = vector.extract_strided_slice %0 {offsets = [0, 3], sizes = [8, 1], strides = [1, 1]} : vector<8x8xf32> to vector<8x1xf32>
    %5 = vector.extract_strided_slice %0 {offsets = [0, 4], sizes = [8, 1], strides = [1, 1]} : vector<8x8xf32> to vector<8x1xf32>
    %6 = vector.extract_strided_slice %0 {offsets = [0, 5], sizes = [8, 1], strides = [1, 1]} : vector<8x8xf32> to vector<8x1xf32>
    %c0_1 = arith.constant 0 : index
    %c0_2 = arith.constant 0 : index
    %7 = vector.load %arg7[%c0_1, %c0_2] : memref<16x128xf32, #tpu.memory_space<vmem>>, vector<16x128xf32>
    %c0_3 = arith.constant 0 : index
    %c0_4 = arith.constant 0 : index
    %8 = vector.load %arg5[%c0_3, %c0_4] : memref<8x8xbf16, #tpu.memory_space<vmem>>, vector<8x8xbf16>
    %c0_5 = arith.constant 0 : index
    %c0_6 = arith.constant 0 : index
    %9 = vector.load %arg1[%c0_5, %c0_6] : memref<8x128xbf16, #tpu.memory_space<vmem>>, vector<8x128xbf16>
    %cst = arith.constant dense<0.000000e+00> : vector<8x128xf32>
    %10 = tpu.matmul %8, %9, %cst {dimension_numbers = #tpu.dot_dimension_numbers<[1], [0], [0], [1], [0, 0, 1, 1], [], []>} : vector<8x8xbf16>, vector<8x128xbf16>, vector<8x128xf32> -> vector<8x128xf32>
    %11 = vector.extract_strided_slice %7 {offsets = [0, 0], sizes = [1, 128], strides = [1, 1]} : vector<16x128xf32> to vector<1x128xf32>
    %12 = vector.broadcast %1 : vector<8x1xf32> to vector<8x128xf32>
    %13 = vector.broadcast %11 : vector<1x128xf32> to vector<8x128xf32>
    %14 = arith.mulf %12, %13 : vector<8x128xf32>
    %15 = vector.extract_strided_slice %7 {offsets = [1, 0], sizes = [1, 128], strides = [1, 1]} : vector<16x128xf32> to vector<1x128xf32>
    %16 = vector.broadcast %2 : vector<8x1xf32> to vector<8x128xf32>
    %17 = vector.broadcast %15 : vector<1x128xf32> to vector<8x128xf32>
    %18 = arith.mulf %16, %17 : vector<8x128xf32>
    %19 = arith.addf %14, %18 : vector<8x128xf32>
    %20 = vector.extract_strided_slice %7 {offsets = [3, 0], sizes = [1, 128], strides = [1, 1]} : vector<16x128xf32> to vector<1x128xf32>
    %21 = vector.broadcast %20 : vector<1x128xf32> to vector<8x128xf32>
    %22 = arith.addf %19, %21 : vector<8x128xf32>
    %23 = vector.broadcast %3 : vector<8x1xf32> to vector<8x128xf32>
    %24 = arith.mulf %23, %22 : vector<8x128xf32>
    %25 = arith.addf %10, %24 : vector<8x128xf32>
    %26 = vector.extract_strided_slice %7 {offsets = [2, 0], sizes = [1, 128], strides = [1, 1]} : vector<16x128xf32> to vector<1x128xf32>
    %27 = vector.broadcast %4 : vector<8x1xf32> to vector<8x128xf32>
    %28 = vector.broadcast %26 : vector<1x128xf32> to vector<8x128xf32>
    %29 = arith.mulf %27, %28 : vector<8x128xf32>
    %30 = arith.addf %25, %29 : vector<8x128xf32>
    %c0_7 = arith.constant 0 : index
    %c0_8 = arith.constant 0 : index
    %31 = vector.load %arg6[%c0_7, %c0_8] : memref<8x8xbf16, #tpu.memory_space<vmem>>, vector<8x8xbf16>
    %c0_9 = arith.constant 0 : index
    %c0_10 = arith.constant 0 : index
    %32 = vector.load %arg2[%c0_9, %c0_10] : memref<8x128xbf16, #tpu.memory_space<vmem>>, vector<8x128xbf16>
    %cst_11 = arith.constant dense<0.000000e+00> : vector<8x128xf32>
    %33 = tpu.matmul %31, %32, %cst_11 {dimension_numbers = #tpu.dot_dimension_numbers<[1], [0], [0], [1], [0, 0, 1, 1], [], []>} : vector<8x8xbf16>, vector<8x128xbf16>, vector<8x128xf32> -> vector<8x128xf32>
    %34 = vector.extract_strided_slice %7 {offsets = [4, 0], sizes = [1, 128], strides = [1, 1]} : vector<16x128xf32> to vector<1x128xf32>
    %35 = vector.broadcast %1 : vector<8x1xf32> to vector<8x128xf32>
    %36 = vector.broadcast %34 : vector<1x128xf32> to vector<8x128xf32>
    %37 = arith.mulf %35, %36 : vector<8x128xf32>
    %38 = vector.extract_strided_slice %7 {offsets = [5, 0], sizes = [1, 128], strides = [1, 1]} : vector<16x128xf32> to vector<1x128xf32>
    %39 = vector.broadcast %2 : vector<8x1xf32> to vector<8x128xf32>
    %40 = vector.broadcast %38 : vector<1x128xf32> to vector<8x128xf32>
    %41 = arith.mulf %39, %40 : vector<8x128xf32>
    %42 = arith.addf %37, %41 : vector<8x128xf32>
    %43 = vector.extract_strided_slice %7 {offsets = [7, 0], sizes = [1, 128], strides = [1, 1]} : vector<16x128xf32> to vector<1x128xf32>
    %44 = vector.broadcast %43 : vector<1x128xf32> to vector<8x128xf32>
    %45 = arith.addf %42, %44 : vector<8x128xf32>
    %cst_12 = arith.constant 0.000000e+00 : f32
    %46 = vector.broadcast %cst_12 : f32 to vector<8x1xf32>
    %47 = arith.cmpf ogt, %5, %46 : vector<8x1xf32>
    %48 = tpu.reciprocal %5 {approx = true} : vector<8x1xf32> -> vector<8x1xf32>
    %cst_13 = arith.constant 0.000000e+00 : f32
    %49 = vector.broadcast %cst_13 : f32 to vector<8x1xf32>
    %50 = arith.select %47, %48, %49 : vector<8x1xi1>, vector<8x1xf32>
    %51 = vector.broadcast %5 : vector<8x1xf32> to vector<8x128xf32>
    %52 = arith.mulf %51, %45 : vector<8x128xf32>
    %53 = arith.addf %33, %52 : vector<8x128xf32>
    %54 = vector.extract_strided_slice %7 {offsets = [6, 0], sizes = [1, 128], strides = [1, 1]} : vector<16x128xf32> to vector<1x128xf32>
    %55 = vector.broadcast %6 : vector<8x1xf32> to vector<8x128xf32>
    %56 = vector.broadcast %54 : vector<1x128xf32> to vector<8x128xf32>
    %57 = arith.mulf %55, %56 : vector<8x128xf32>
    %58 = arith.addf %53, %57 : vector<8x128xf32>
    %59 = vector.broadcast %50 : vector<8x1xf32> to vector<8x128xf32>
    %60 = arith.mulf %58, %59 : vector<8x128xf32>
    %c0_14 = arith.constant 0 : index
    %c0_15 = arith.constant 0 : index
    %61 = vector.load %arg3[%c0_14, %c0_15] : memref<8x34xbf16, #tpu.memory_space<vmem>>, vector<8x34xbf16>
    %c0_16 = arith.constant 0 : index
    %c0_17 = arith.constant 0 : index
    %62 = vector.load %arg8[%c0_16, %c0_17] : memref<34x128xbf16, #tpu.memory_space<vmem>>, vector<34x128xbf16>
    %cst_18 = arith.constant dense<0.000000e+00> : vector<8x128xf32>
    %63 = tpu.matmul %61, %62, %cst_18 {dimension_numbers = #tpu.dot_dimension_numbers<[1], [0], [0], [1], [0, 0, 1, 1], [], []>} : vector<8x34xbf16>, vector<34x128xbf16>, vector<8x128xf32> -> vector<8x128xf32>
    %64 = arith.truncf %30 : vector<8x128xf32> to vector<8x128xbf16>
    %c0_19 = arith.constant 0 : index
    %c0_20 = arith.constant 0 : index
    %65 = vector.load %arg9[%c0_19, %c0_20] : memref<128x128xbf16, #tpu.memory_space<vmem>>, vector<128x128xbf16>
    %cst_21 = arith.constant dense<0.000000e+00> : vector<8x128xf32>
    %66 = tpu.matmul %64, %65, %cst_21 {dimension_numbers = #tpu.dot_dimension_numbers<[1], [0], [0], [1], [0, 0, 1, 1], [], []>} : vector<8x128xbf16>, vector<128x128xbf16>, vector<8x128xf32> -> vector<8x128xf32>
    %67 = arith.addf %63, %66 : vector<8x128xf32>
    %68 = arith.truncf %60 : vector<8x128xf32> to vector<8x128xbf16>
    %c0_22 = arith.constant 0 : index
    %c0_23 = arith.constant 0 : index
    %69 = vector.load %arg10[%c0_22, %c0_23] : memref<128x128xbf16, #tpu.memory_space<vmem>>, vector<128x128xbf16>
    %cst_24 = arith.constant dense<0.000000e+00> : vector<8x128xf32>
    %70 = tpu.matmul %68, %69, %cst_24 {dimension_numbers = #tpu.dot_dimension_numbers<[1], [0], [0], [1], [0, 0, 1, 1], [], []>} : vector<8x128xbf16>, vector<128x128xbf16>, vector<8x128xf32> -> vector<8x128xf32>
    %71 = arith.addf %67, %70 : vector<8x128xf32>
    %72 = vector.extract_strided_slice %7 {offsets = [8, 0], sizes = [1, 128], strides = [1, 1]} : vector<16x128xf32> to vector<1x128xf32>
    %73 = vector.broadcast %72 : vector<1x128xf32> to vector<8x128xf32>
    %74 = arith.addf %71, %73 : vector<8x128xf32>
    %c0_25 = arith.constant 0 : index
    %c0_26 = arith.constant 0 : index
    %75 = vector.load %arg11[%c0_25, %c0_26] : memref<8x128xf32, #tpu.memory_space<vmem>>, vector<8x128xf32>
    tpu.vector_store %arg11[%c0_25, %c0_26], %74 {strides = array<i32>} : memref<8x128xf32, #tpu.memory_space<vmem>>, vector<8x128xf32>,
    return
  }
  func.func @transform_0(%arg0: i32) -> (i32, i32) {
    %c0_i32 = arith.constant 0 : i32
    %c0_i32_0 = arith.constant 0 : i32
    %c0_i32_1 = arith.constant 0 : i32
    return %c0_i32, %c0_i32_0 : i32, i32
  }
  func.func @transform_1(%arg0: i32) -> (i32, i32) {
    %c0_i32 = arith.constant 0 : i32
    %c0_i32_0 = arith.constant 0 : i32
    %c0_i32_1 = arith.constant 0 : i32
    return %c0_i32, %c0_i32_0 : i32, i32
  }
  func.func @transform_2(%arg0: i32) -> (i32, i32) {
    %c0_i32 = arith.constant 0 : i32
    %c0_i32_0 = arith.constant 0 : i32
    return %arg0, %c0_i32 : i32, i32
  }
  func.func @transform_3(%arg0: i32) -> (i32, i32) {
    %c0_i32 = arith.constant 0 : i32
    %c0_i32_0 = arith.constant 0 : i32
    return %arg0, %c0_i32 : i32, i32
  }
  func.func @transform_4(%arg0: i32) -> (i32, i32) {
    %c0_i32 = arith.constant 0 : i32
    %c0_i32_0 = arith.constant 0 : i32
    return %arg0, %c0_i32 : i32, i32
  }
  func.func @transform_5(%arg0: i32) -> (i32, i32) {
    %c0_i32 = arith.constant 0 : i32
    %c0_i32_0 = arith.constant 0 : i32
    return %arg0, %c0_i32 : i32, i32
  }
  func.func @transform_6(%arg0: i32) -> (i32, i32) {
    %c0_i32 = arith.constant 0 : i32
    %c0_i32_0 = arith.constant 0 : i32
    %c0_i32_1 = arith.constant 0 : i32
    return %c0_i32, %c0_i32_0 : i32, i32
  }
  func.func @transform_7(%arg0: i32) -> (i32, i32) {
    %c0_i32 = arith.constant 0 : i32
    %c0_i32_0 = arith.constant 0 : i32
    %c0_i32_1 = arith.constant 0 : i32
    return %c0_i32, %c0_i32_0 : i32, i32
  }
  func.func @transform_8(%arg0: i32) -> (i32, i32) {
    %c0_i32 = arith.constant 0 : i32
    %c0_i32_0 = arith.constant 0 : i32
    %c0_i32_1 = arith.constant 0 : i32
    return %c0_i32, %c0_i32_0 : i32, i32
  }
  func.func @transform_9(%arg0: i32) -> (i32, i32) {
    %c0_i32 = arith.constant 0 : i32
    %c0_i32_0 = arith.constant 0 : i32
    %c0_i32_1 = arith.constant 0 : i32
    return %c0_i32, %c0_i32_0 : i32, i32
  }
  func.func @transform_10(%arg0: i32) -> (i32, i32) {
    %c0_i32 = arith.constant 0 : i32
    %c0_i32_0 = arith.constant 0 : i32
    return %arg0, %c0_i32 : i32, i32
  }
}

</mosaic_0001>

<bundles_post_ra>
// kernel: tpu_custom_call.1
= control target key start
LH: loop header
LB: loop body
LE: loop exit
PB: predicated region body
PF: predicated region fallthrough
CT: control target
= control target key end

     0   :  { %15 = vsyncpa [#allocation3], 0  ;;  %s1231_s0 = inlined_call_operand.hbm [shape: bf16[8,128], index: 0, kind: input, shape index: {}]   ;;  %s1232_s1 = inlined_call_operand.hbm [shape: bf16[8,128], index: 1, kind: input, shape index: {}]   ;;  %s1233_s2 = inlined_call_operand.vmem [shape: bf16[8,34], index: 2, kind: input, shape index: {}]   ;;  %s1234_s3 = inlined_call_operand.hbm [shape: f32[8,8], index: 3, kind: input, shape index: {}]   ;;  %s1235_s4 = inlined_call_operand.hbm [shape: bf16[8,8], index: 4, kind: input, shape index: {}]   ;;  %s1236_s5 = inlined_call_operand.hbm [shape: bf16[8,8], index: 5, kind: input, shape index: {}]   ;;  %s1237_s6 = inlined_call_operand.hbm [shape: f32[16,128], index: 6, kind: input, shape index: {}]   ;;  %s1238_s7 = inlined_call_operand.vmem [shape: bf16[34,128], index: 7, kind: input, shape index: {}]   ;;  %s1239_s8 = inlined_call_operand.hbm [shape: bf16[128,128], index: 8, kind: input, shape index: {}]   ;;  %s1240_s9 = inlined_call_operand.hbm [shape: bf16[128,128], index: 9, kind: input, shape index: {}]   ;;  %s1241_s10 = inlined_call_operand.hbm [shape: f32[8,128], index: 10, kind: output, shape index: {}]  }
   0x1   :  { %16 = vsyncpa [#allocation6], 0 }
   0x2   :  { %17 = vsyncpa [#allocation9], 0 }
   0x3   :  { %18 = vsyncpa [#allocation12], 0 }
   0x4   :  { %19 = vsyncpa [#allocation15], 0 }
   0x5   :  { %20 = vsyncpa [#allocation4], 0  ;;  %s992_s13 = smov [#allocation5]   ;;  %s993_s15 = smov [#allocation8]  }
   0x6   :  { %s37_s14 = sshll.u32 %s992_s13, 4  ;;  %s59_s16 = sshll.u32 %s993_s15, 4  ;;  %s38_s14 = int_to_ptr.vmem [resolvable:$true] %s37_s14  ;;  %s60_s16 = int_to_ptr.vmem [resolvable:$true] %s59_s16 }
   0x7   :  { %s782_s19 = scalar_lea.hbm %s1232_s1, 64 }
   0x8   :  { %p783_p0 = scmp.ne.s32.totalorder %s1232_s1, %s782_s19  ;;  %p786_p1 = scmp.lt.u32.totalorder %s782_s19, %s1232_s1 }
   0xa   :  { %p788_p2 = pnand %p786_p1, %p783_p0 }
   0xc   :  { %791 = shalt.err (!%p788_p2)
}
   0xd   :  { %s792_s24 = scalar_lea.vmem %s38_s14, 64  ;;  %p797_p4 = scmp.lt.s32.totalorder %s38_s14, %s38_s14 }
   0xe   :  { %p793_p3 = scmp.ne.s32.totalorder %s38_s14, %s792_s24  ;;  %p798_p5 = scmp.lt.s32.totalorder %s792_s24, %s792_s24 }
  0x10   :  { %p799_p6 = por %p798_p5, %p797_p4 }
  0x12   :  { %p800_p7 = pnand %p799_p6, %p793_p3 }
  0x14   :  { %803 = shalt.err (!%p800_p7)
}
  0x15   :  { %40 = dma.hbm_to_vmem [thread:$0]  %s1232_s1, 64, %s38_s14, [#allocation6]  }
  0x16   :  { %s804_s29 = scalar_lea.hbm %s1235_s4, 64 }
  0x17   :  { %p805_p8 = scmp.ne.s32.totalorder %s1235_s4, %s804_s29  ;;  %p808_p9 = scmp.lt.u32.totalorder %s804_s29, %s1235_s4 }
  0x19   :  { %p810_p10 = pnand %p808_p9, %p805_p8 }
  0x1b   :  { %813 = shalt.err (!%p810_p10)
}
  0x1c   :  { %s814_s15 = scalar_lea.vmem %s60_s16, 64  ;;  %p819_p12 = scmp.lt.s32.totalorder %s60_s16, %s60_s16 }
  0x1d   :  { %p815_p11 = scmp.ne.s32.totalorder %s60_s16, %s814_s15  ;;  %p820_p13 = scmp.lt.s32.totalorder %s814_s15, %s814_s15 }
  0x1f   :  { %p821_p0 = por %p820_p13, %p819_p12 }
  0x21   :  { %p822_p1 = pnand %p821_p0, %p815_p11 }
  0x23   :  { %825 = shalt.err (!%p822_p1)
}
  0x24   :  { %62 = dma.hbm_to_vmem [thread:$0]  %s1235_s4, 64, %s60_s16, [#allocation9]  }
  0x25   :  { %s994_s17 = smov [#allocation11]   ;;  %s826_s21 = scalar_lea.hbm %s1237_s6, 256 }
  0x26   :  { %s78_s18 = sshll.u32 %s994_s17, 4  ;;  %p827_p2 = scmp.ne.s32.totalorder %s1237_s6, %s826_s21  ;;  %s79_s18 = int_to_ptr.vmem [resolvable:$true] %s78_s18 }
  0x27   :  { %p830_p3 = scmp.lt.u32.totalorder %s826_s21, %s1237_s6 }
  0x29   :  { %p832_p4 = pnand %p830_p3, %p827_p2 }
  0x2b   :  { %835 = shalt.err (!%p832_p4)
}
  0x2c   :  { %s836_s26 = scalar_lea.vmem %s79_s18, 256  ;;  %p841_p6 = scmp.lt.s32.totalorder %s79_s18, %s79_s18 }
  0x2d   :  { %p837_p5 = scmp.ne.s32.totalorder %s79_s18, %s836_s26  ;;  %p842_p7 = scmp.lt.s32.totalorder %s836_s26, %s836_s26 }
  0x2f   :  { %p843_p8 = por %p842_p7, %p841_p6 }
  0x31   :  { %p844_p9 = pnand %p843_p8, %p837_p5 }
  0x33   :  { %847 = shalt.err (!%p844_p9)
}
  0x34   :  { %s995_s4 = smov 128   ;;  %s996_s16 = smov 8  }
  0x35   :  { %84 = dma.hbm_to_vmem [thread:$0]  %s1237_s6, 256, %s79_s18, [#allocation12], %s995_s4, %s995_s4, %s996_s16  }
  0x36   :  { %s997_s29 = smov [#allocation2]   ;;  %s998_s11 = smov [#allocation7]  }
  0x37   :  { %s27_s30 = sshll.u32 %s997_s29, 4  ;;  %s49_s12 = sshll.u32 %s998_s11, 4  ;;  %s28_s30 = int_to_ptr.vmem [resolvable:$true] %s27_s30  ;;  %s50_s12 = int_to_ptr.vmem [resolvable:$true] %s49_s12 }
  0x38   :  { %s848_s1 = scalar_lea.hbm %s1231_s0, 64 }
  0x39   :  { %p849_p10 = scmp.ne.s32.totalorder %s1231_s0, %s848_s1  ;;  %p852_p11 = scmp.lt.u32.totalorder %s848_s1, %s1231_s0 }
  0x3b   :  { %p854_p12 = pnand %p852_p11, %p849_p10 }
  0x3d   :  { %857 = shalt.err (!%p854_p12)
}
  0x3e   :  { %s858_s6 = scalar_lea.vmem %s28_s30, 64  ;;  %p863_p0 = scmp.lt.s32.totalorder %s28_s30, %s28_s30 }
  0x3f   :  { %p859_p13 = scmp.ne.s32.totalorder %s28_s30, %s858_s6  ;;  %p864_p1 = scmp.lt.s32.totalorder %s858_s6, %s858_s6 }
  0x41   :  { %p865_p2 = por %p864_p1, %p863_p0 }
  0x43   :  { %p866_p3 = pnand %p865_p2, %p859_p13 }
  0x45   :  { %869 = shalt.err (!%p866_p3)
}
  0x46   :  { %30 = dma.hbm_to_vmem [thread:$0]  %s1231_s0, 64, %s28_s30, [#allocation3]  }
  0x47   :  { %s870_s24 = scalar_lea.hbm %s1234_s3, 128 }
  0x48   :  { %p871_p4 = scmp.ne.s32.totalorder %s1234_s3, %s870_s24  ;;  %p874_p5 = scmp.lt.u32.totalorder %s870_s24, %s1234_s3 }
  0x4a   :  { %p876_p6 = pnand %p874_p5, %p871_p4 }
  0x4c   :  { %879 = shalt.err (!%p876_p6)
}
  0x4d   :  { %s880_s27 = scalar_lea.vmem %s50_s12, 128  ;;  %p885_p8 = scmp.lt.s32.totalorder %s50_s12, %s50_s12 }
  0x4e   :  { %p881_p7 = scmp.ne.s32.totalorder %s50_s12, %s880_s27  ;;  %p886_p9 = scmp.lt.s32.totalorder %s880_s27, %s880_s27 }
  0x50   :  { %p887_p10 = por %p886_p9, %p885_p8 }
  0x52   :  { %p888_p11 = pnand %p887_p10, %p881_p7 }
  0x54   :  { %891 = shalt.err (!%p888_p11)
}
  0x55   :  { %52 = dma.hbm_to_vmem [thread:$0]  %s1234_s3, 128, %s50_s12, [#allocation6]  }
  0x56   :  { %s999_s29 = smov [#allocation10]   ;;  %s1000_s11 = smov [#allocation13]  }
  0x57   :  { %s69_s30 = sshll.u32 %s999_s29, 4  ;;  %s92_s13 = sshll.u32 %s1000_s11, 4  ;;  %s70_s30 = int_to_ptr.vmem [resolvable:$true] %s69_s30  ;;  %s93_s13 = int_to_ptr.vmem [resolvable:$true] %s92_s13 }
  0x58   :  { %s892_s14 = scalar_lea.hbm %s1236_s5, 64 }
  0x59   :  { %p893_p12 = scmp.ne.s32.totalorder %s1236_s5, %s892_s14  ;;  %p896_p13 = scmp.lt.u32.totalorder %s892_s14, %s1236_s5 }
  0x5b   :  { %p898_p0 = pnand %p896_p13, %p893_p12 }
  0x5d   :  { %901 = shalt.err (!%p898_p0)
}
  0x5e   :  { %s902_s3 = scalar_lea.vmem %s70_s30, 64  ;;  %p907_p2 = scmp.lt.s32.totalorder %s70_s30, %s70_s30 }
  0x5f   :  { %p903_p1 = scmp.ne.s32.totalorder %s70_s30, %s902_s3  ;;  %p908_p3 = scmp.lt.s32.totalorder %s902_s3, %s902_s3 }
  0x61   :  { %p909_p4 = por %p908_p3, %p907_p2 }
  0x63   :  { %p910_p5 = pnand %p909_p4, %p903_p1 }
  0x65   :  { %913 = shalt.err (!%p910_p5)
}
  0x66   :  { %72 = dma.hbm_to_vmem [thread:$0]  %s1236_s5, 64, %s70_s30, [#allocation9]  }
  0x67   :  { %s914_s23 = scalar_lea.hbm %s1239_s8, 1024 }
  0x68   :  { %p915_p6 = scmp.ne.s32.totalorder %s1239_s8, %s914_s23  ;;  %p918_p7 = scmp.lt.u32.totalorder %s914_s23, %s1239_s8 }
  0x6a   :  { %p920_p8 = pnand %p918_p7, %p915_p6 }
  0x6c   :  { %923 = shalt.err (!%p920_p8)
}
  0x6d   :  { %s924_s16 = scalar_lea.vmem %s93_s13, 1024  ;;  %p929_p10 = scmp.lt.s32.totalorder %s93_s13, %s93_s13 }
  0x6e   :  { %p925_p9 = scmp.ne.s32.totalorder %s93_s13, %s924_s16  ;;  %p930_p11 = scmp.lt.s32.totalorder %s924_s16, %s924_s16 }
  0x70   :  { %p931_p12 = por %p930_p11, %p929_p10 }
  0x72   :  { %p932_p13 = pnand %p931_p12, %p925_p9 }
  0x74   :  { %935 = shalt.err (!%p932_p13)
}
  0x75   :  { %s1001_s5 = smov 64   ;;  %s1002_s27 = smov 4  }
  0x76   :  { %98 = dma.hbm_to_vmem [thread:$0]  %s1239_s8, 1024, %s93_s13, [#allocation12], %s1001_s5, %s1001_s5, %s1002_s27  }
  0x77   :  { %s1003_s29 = smov [#allocation14]   ;;  %s936_s1 = scalar_lea.hbm %s1240_s9, 1024 }
  0x78   :  { %s104_s30 = sshll.u32 %s1003_s29, 4  ;;  %p937_p0 = scmp.ne.s32.totalorder %s1240_s9, %s936_s1  ;;  %s105_s30 = int_to_ptr.vmem [resolvable:$true] %s104_s30 }
  0x79   :  { %p940_p1 = scmp.lt.u32.totalorder %s936_s1, %s1240_s9 }
  0x7b   :  { %p942_p2 = pnand %p940_p1, %p937_p0 }
  0x7d   :  { %945 = shalt.err (!%p942_p2)
}
  0x7e   :  { %s946_s6 = scalar_lea.vmem %s105_s30, 1024  ;;  %p951_p4 = scmp.lt.s32.totalorder %s105_s30, %s105_s30 }
  0x7f   :  { %p947_p3 = scmp.ne.s32.totalorder %s105_s30, %s946_s6  ;;  %p952_p5 = scmp.lt.s32.totalorder %s946_s6, %s946_s6 }
  0x81   :  { %p953_p6 = por %p952_p5, %p951_p4 }
  0x83   :  { %p954_p7 = pnand %p953_p6, %p947_p3 }
  0x85   :  { %957 = shalt.err (!%p954_p7)
}
  0x86   :  { %110 = dma.hbm_to_vmem [thread:$0]  %s1240_s9, 1024, %s105_s30, [#allocation15], %s1001_s5, %s1001_s5, %s1002_s27  }
  0x87   :  { %980 = dma.done.wait [#allocation3], 64  }
  0x88   :  { %981 = vsyncadd [#allocation3], 4294967232 }
  0x89   :  { %982 = dma.done.wait [#allocation6], 192  }
  0x8a   :  { %983 = vsyncadd [#allocation6], 4294967104 }
  0x8b   :  { %984 = dma.done.wait [#allocation9], 128  }
  0x8c   :  { %985 = vsyncadd [#allocation9], 4294967168 }
  0x8d   :  { %986 = dma.done.wait [#allocation12], 1280  }
  0x8e   :  { %987 = vsyncadd [#allocation12], 4294966016 }
  0x8f   :  { %988 = dma.done.wait [#allocation15], 1024  }
  0x90   :  { %989 = vsyncadd [#allocation15], 4294966272  ;;  %v1004_v0 = vmov 0.0   ;;  %vm1005_vm0 = vmmov 0   ;;  %v1006_v1 = vmov 0   ;;  %v1007_v2 = vmov 2  }
  0x91   :  { %670 = vmatprep.subr.bf16.mxu0 %v1004_v0  ;;  %672 = vmatprep.mubr.msk.bf16.mxu0 %vm1005_vm0, %v1004_v0  ;;  %vm175_vm1 = vcmask 1043456   ;;  %v140_v3 = vld [vmem:[#allocation2] sm:$0xf]  ;;  %v230_v4 = vld [vmem:[#allocation5] sm:$0xf]  ;;  %v136_v7 = vld [vmem:[#allocation7] sm:$0xff]  ;;  %v146_v37 = vlaneseq }
  0x92   :  { %753 = vset.pattern.permute.xlu0 %v1006_v1  ;;  %755 = vset.pattern.permute.xlu1 %v1007_v2  ;;  %v177_v5 = vsel %vm175_vm1, %v140_v3, 0  ;;  %v139_v6 = vld [vmem:[#allocation8] sm:$0xf]  ;;  %v761_v8 = vld [vmem:[%s1238_s7] sm:$0xff]   ;;  %v259_v9 = vsel %vm175_vm1, %v230_v4, 0  ;;  %vm171_vm2 = vcmask 64512   ;;  %780 = vrcp.f32 %v136_v7 }
  0x93   :  { %702 = vmatprep.subr.bf16.mxu1 %v1004_v0  ;;  %708 = vmatprep.mubr.msk.bf16.mxu1 %vm1005_vm0, %v1004_v0  ;;  %v763_v10 = vld [vmem:[%s1238_s7 + $0x8] sm:$0xff]   ;;  %v765_v11 = vld [vmem:[%s1238_s7 + $0x10] ss:$0 sps:$4 sm:$0x11]   ;;  %v1008_v12 = vmov 1   ;;  %v1009_v13 = vmov 4  }
  0x94   :  { %671 = vmatpush3.bf16.msra.mxu0 %v177_v5  ;;  %143 = vperm.xlu0 %753, %v136_v7   ;;  %v229_v14 = vld [vmem:[#allocation10] sm:$0xf]  ;;  %vm447_vm3 = vcmask 1040384   ;;  %v762_v15 = vld [vmem:[#allocation13] sm:$0xff]   ;;  %vm247_vm4 = vcmp.gt.f32.partialorder %v136_v7, 0.0  ;;  %v1010_v17 = vmov 3  }
  0x95   :  { %676 = vmatprep.subr.bf16.mxu0 %v1004_v0  ;;  %167 = vperm.xlu1 %755, %v136_v7   ;;  %v1011_v18 = vmov 5   ;;  %v449_v19 = vsel %vm447_vm3, %v765_v11, 0  ;;  %v764_v20 = vld [vmem:[#allocation13 + $0x8] sm:$0xff]   ;;  %vm443_vm5 = vcmask 277504   ;;  %v317_v22 = vld [vmem:[%s1233_s2] sm:$0xf] }
  0x96   :  { %703 = vmatpush3.bf16.msra.mxu1 %v761_v8  ;;  %v767_v23 = vld [vmem:[#allocation14] sm:$0xff]   ;;  %v766_v24 = vld [vmem:[#allocation13 + $0x10] sm:$0xff]   ;;  %v769_v25 = vld [vmem:[#allocation14 + $0x8] sm:$0xff]   ;;  %v1209_v38 = vshrl.u32 %v146_v37, 7  ;;  %s1012_s2 = smov [#allocation16]  }
  0x97   :  { %673 = vmatmul.mubr.msk.bf16.vlgmr.msra.gmra.mrb[0].mxu0 %vm171_vm2, %v139_v6  ;;  %704 = vmatprep.subr.bf16.mxu1 %v1004_v0  ;;  %v768_v26 = vld [vmem:[#allocation13 + $0x18] sm:$0xff]   ;;  %v771_v27 = vld [vmem:[#allocation14 + $0x10] sm:$0xff]   ;;  %v770_v28 = vld [vmem:[#allocation13 + $0x20] sm:$0xff]   ;;  %s609_s24 = sshll.u32 %s1012_s2, 4  ;;  %s610_s24 = int_to_ptr.vmem [resolvable:$true] %s609_s24 }
  0x98   :  { %677 = vmatpush3.bf16.msra.mxu0 %v259_v9  ;;  %678 = vmatprep.mubr.msk.bf16.mxu0 %vm1005_vm0, %v1004_v0  ;;  %v773_v29 = vld [vmem:[#allocation14 + $0x18] sm:$0xff]   ;;  %v772_v30 = vld [vmem:[#allocation13 + $0x28] sm:$0xff]   ;;  %v774_v31 = vld [vmem:[#allocation13 + $0x30] sm:$0xff]   ;;  %v148_v40 = vsub.s32 0, %v1209_v38  ;;  %v157_v41 = vsub.s32 1, %v1209_v38  ;;  %v163_v49 = vsub.s32 3, %v1209_v38  ;;  %p963_p9 = scmp.lt.s32.totalorder %s610_s24, %s610_s24 }
  0x99   :  { %754 = vset.pattern.permute.xlu0 %v1008_v12  ;;  %756 = vset.pattern.permute.xlu1 %v1009_v13  ;;  %v775_v32 = vld [vmem:[#allocation14 + $0x20] sm:$0xff]   ;;  %v776_v33 = vld [vmem:[#allocation13 + $0x38] sm:$0xff]   ;;  %v777_v34 = vld [vmem:[#allocation14 + $0x28] sm:$0xff]   ;;  %v233_v50 = vsub.s32 4, %v1209_v38  ;;  %v238_v51 = vsub.s32 5, %v1209_v38  ;;  %v225_v57 = vsub.s32 2, %v1209_v38 }
  0x9a   :  { %152 = vperm.xlu0 %754, %v136_v7   ;;  %251 = vperm.xlu1 %756, %v136_v7   ;;  %v778_v35 = vld [vmem:[#allocation14 + $0x30] sm:$0xff]   ;;  %v779_v36 = vld [vmem:[#allocation14 + $0x38] sm:$0xff]   ;;  %v244_v61 = vsub.s32 7, %v1209_v38  ;;  %v307_v4 = vsub.s32 6, %v1209_v38  ;;  %s958_s25 = scalar_lea.vmem %s610_s24, 128 }
  0x9b   :  { %682 = vmatprep.subr.bf16.mxu0 %v1004_v0  ;;  %705 = vmatpush3.bf16.msra.mxu1 %v763_v10  ;;  %v137_v42 = vld [vmem:[#allocation11] sm:$0xff]  ;;  %p959_p8 = scmp.ne.s32.totalorder %s610_s24, %s958_s25  ;;  %p964_p10 = scmp.lt.s32.totalorder %s958_s25, %s958_s25 }
  0x9c   :  { %706 = vmatprep.subr.bf16.mxu1 %v1004_v0  ;;  %v781_v16 = vpop.eup %780  ;;  %v149_v43 = vrot.slane %v137_v42, %v148_v40  ;;  %v158_v44 = vrot.slane %v137_v42, %v157_v41  ;;  %v164_v53 = vrot.slane %v137_v42, %v163_v49  ;;  %v234_v55 = vrot.slane %v137_v42, %v233_v50 }
  0x9d   :  { %v249_v21 = vsel %vm247_vm4, %v781_v16, 0.0  ;;  %v239_v56 = vrot.slane %v137_v42, %v238_v51  ;;  %v226_v62 = vrot.slane %v137_v42, %v225_v57  ;;  %v245_v2 = vrot.slane %v137_v42, %v244_v61  ;;  %p965_p11 = por %p964_p10, %p963_p9 }
  0x9e   :  { %757 = vset.pattern.permute.xlu1 %v1010_v17  ;;  %758 = vset.pattern.permute.xlu0 %v1011_v18  ;;  %v308_v12 = vrot.slane %v137_v42, %v307_v4 }
  0x9f   :  { %679 = vmatmul.mubr.msk.bf16.vlgmr.msra.gmra.mrb[4].mxu0 %vm171_vm2, %v229_v14  ;;  %220 = vperm.xlu1 %757, %v136_v7   ;;  %p966_p12 = pnand %p965_p11, %p959_p8 }
  0xa0   :  { %302 = vperm.xlu0 %758, %v136_v7   ;;  %683 = vmatpush3.bf16.msra.mxu0 %v762_v15 }
  0xa1   :  { %684 = vmatprep.subr.bf16.mxu0 %v1004_v0  ;;  %707 = vmatpush3.bf16.msra.mxu1 %v449_v19 }
  0xa2   :  { %712 = vmatprep.subr.bf16.mxu1 %v1004_v0  ;;  %698 = vmatprep.mubr.msk.bf16.mxu0 %vm1005_vm0, %v1004_v0 }
  0xa3   :  { %759 = vset.pattern.permute.xlu1 %v1009_v13 }
  0xa4   :  { %313 = vperm.xlu1 %759, %v249_v21   ;;  %685 = vmatpush3.bf16.msra.mxu0 %v764_v20 }
  0xa5   :  { %686 = vmatprep.subr.bf16.mxu0 %v1004_v0  ;;  %709 = vmatmul.mubr.msk.bf16.vlgmr.msra.gmra.mrb[0].mxu1 %vm443_vm5, %v317_v22 }
  0xa6   :  { %713 = vmatpush3.bf16.msra.mxu1 %v767_v23  ;;  %728 = vmatprep.mubr.msk.bf16.mxu1 %vm1005_vm0, %v1004_v0 }
  0xa7   :  { %714 = vmatprep.subr.bf16.mxu1 %v1004_v0  ;;  %760 = vset.pattern.permute.xlu0 %v1009_v13 }
  0xa8   :  { %687 = vmatpush3.bf16.msra.mxu0 %v766_v24 }
  0xa9   :  { %688 = vmatprep.subr.bf16.mxu0 %v1004_v0 }
  0xaa   :  { %715 = vmatpush3.bf16.msra.mxu1 %v769_v25 }
  0xab   :  { %716 = vmatprep.subr.bf16.mxu1 %v1004_v0 }
  0xac   :  { %689 = vmatpush3.bf16.msra.mxu0 %v768_v26 }
  0xad   :  { %690 = vmatprep.subr.bf16.mxu0 %v1004_v0 }
  0xae   :  { %717 = vmatpush3.bf16.msra.mxu1 %v771_v27 }
  0xaf   :  { %718 = vmatprep.subr.bf16.mxu1 %v1004_v0 }
  0xb0   :  { %691 = vmatpush3.bf16.msra.mxu0 %v770_v28 }
  0xb1   :  { %692 = vmatprep.subr.bf16.mxu0 %v1004_v0 }
  0xb2   :  { %719 = vmatpush3.bf16.msra.mxu1 %v773_v29 }
  0xb3   :  { %720 = vmatprep.subr.bf16.mxu1 %v1004_v0 }
  0xb4   :  { %693 = vmatpush3.bf16.msra.mxu0 %v772_v30 }
  0xb5   :  { %694 = vmatprep.subr.bf16.mxu0 %v1004_v0 }
  0xb6   :  { %721 = vmatpush3.bf16.msra.mxu1 %v775_v32 }
  0xb7   :  { %722 = vmatprep.subr.bf16.mxu1 %v1004_v0 }
  0xb8   :  { %695 = vmatpush3.bf16.msra.mxu0 %v774_v31 }
  0xb9   :  { %696 = vmatprep.subr.bf16.mxu0 %v1004_v0 }
  0xba   :  { %723 = vmatpush3.bf16.msra.mxu1 %v777_v34 }
  0xbb   :  { %724 = vmatprep.subr.bf16.mxu1 %v1004_v0 }
  0xbc   :  { %697 = vmatpush3.bf16.msra.mxu0 %v776_v33 }
  0xbe   :  { %725 = vmatpush3.bf16.msra.mxu1 %v778_v35  ;;  %v138_v35 = vld [vmem:[#allocation11 + $0x8] sm:$0xff] }
  0xbf   :  { %726 = vmatprep.subr.bf16.mxu1 %v1004_v0 }
  0xc2   :  { %727 = vmatpush3.bf16.msra.mxu1 %v779_v36  ;;  %v600_v36 = vrot.slane %v138_v35, %v148_v40 }
 0x113   :  { %v144_v39 = vpop.permute.xlu0 %143 }
 0x114   :  { %v168_v46 = vpop.permute.xlu1 %167  ;;  %v150_v47 = vmul.f32 %v149_v43, %v144_v39  ;;  %v235_v59 = vmul.f32 %v234_v55, %v144_v39 }
 0x119   :  { %v153_v45 = vpop.permute.xlu0 %152  ;;  %v252_v54 = vpop.permute.xlu1 %251 }
 0x11a   :  { %v159_v48 = vmul.f32 %v158_v44, %v153_v45  ;;  %v240_v60 = vmul.f32 %v239_v56, %v153_v45 }
 0x11c   :  { %v160_v52 = vadd.f32 %v159_v48, %v150_v47  ;;  %v241_v1 = vadd.f32 %v240_v60, %v235_v59 }
 0x11e   :  { %v165_v58 = vadd.f32 %v164_v53, %v160_v52  ;;  %v221_v63 = vpop.permute.xlu1 %220  ;;  %v246_v9 = vadd.f32 %v245_v2, %v241_v1 }
 0x11f   :  { %v227_v3 = vmul.f32 %v226_v62, %v221_v63  ;;  %v303_v13 = vpop.permute.xlu0 %302 }
 0x120   :  { %v170_v0 = vmul.f32 %v168_v46, %v165_v58  ;;  %v254_v15 = vmul.f32 %v252_v54, %v246_v9  ;;  %v309_v16 = vmul.f32 %v308_v12, %v303_v13 }
 0x123   :  { %v314_v21 = vpop.permute.xlu1 %313 }
 0x16a   :  { %v213_v5 = vpop.f32.mrb[0].mxu0 }
 0x16b   :  { %v214_v6 = vadd.f32 %v213_v5, %v170_v0  ;;  %v674_v7 = vpop.f32.mrb[1].mxu0 }
 0x16c   :  { %v216_v8 = vpop.f32.mrb[2].mxu0 }
 0x16d   :  { %v228_v10 = vadd.f32 %v227_v3, %v214_v6  ;;  %v675_v11 = vpop.f32.mrb[3].mxu0 }
 0x16f   :  { %v323_v14 = vpack.c.bf16 %v228_v10, %v228_v10 }
 0x171   :  { %699 = vmatmul.mubr.bf16.vlgmr.msra.gmra.mrb[8].mxu0 %v323_v14 }
 0x172   :  { %v295_v17 = vpop.f32.mrb[4].mxu0 }
 0x173   :  { %v296_v18 = vadd.f32 %v295_v17, %v254_v15  ;;  %v680_v19 = vpop.f32.mrb[5].mxu0 }
 0x174   :  { %v298_v20 = vpop.f32.mrb[6].mxu0 }
 0x175   :  { %v681_v22 = vpop.f32.mrb[7].mxu0  ;;  %v310_v23 = vadd.f32 %v309_v16, %v296_v18 }
 0x177   :  { %v316_v24 = vmul.f32 %v314_v21, %v310_v23 }
 0x178   :  { %v485_v25 = vpop.f32.mrb[0].mxu1 }
 0x179   :  { %v491_v26 = vpack.c.bf16 %v316_v24, %v316_v24  ;;  %v710_v27 = vpop.f32.mrb[1].mxu1 }
 0x17a   :  { %v488_v28 = vpop.f32.mrb[2].mxu1 }
 0x17b   :  { %729 = vmatmul.mubr.bf16.vlgmr.msra.gmra.mrb[4].mxu1 %v491_v26  ;;  %v711_v29 = vpop.f32.mrb[3].mxu1 }
 0x244   :  { %v422_v30 = vpop.f32.mrb[8].mxu0 }
 0x245   :  { %v486_v31 = vadd.f32 %v485_v25, %v422_v30  ;;  %v700_v32 = vpop.f32.mrb[9].mxu0 }
 0x246   :  { %v425_v33 = vpop.f32.mrb[10].mxu0 }
 0x247   :  { %v701_v34 = vpop.f32.mrb[11].mxu0 }
 0x24e   :  { %v590_v37 = vpop.f32.mrb[4].mxu1 }
 0x24f   :  { %v596_v38 = vadd.f32 %v590_v37, %v486_v31  ;;  %v730_v39 = vpop.f32.mrb[5].mxu1 }
 0x250   :  { %v593_v41 = vpop.f32.mrb[6].mxu1 }
 0x251   :  { %v601_v42 = vadd.f32 %v600_v36, %v596_v38  ;;  %v731_v43 = vpop.f32.mrb[7].mxu1 }
 0x253   :  { %602 = vst [vmem:[#allocation16] sm:$0xff] %v601_v42 }
 0x254   :  { %969 = shalt.err (!%p966_p12)
}
 0x255   :  { %s970_s16 = scalar_lea.hbm %s1241_s10, 128 }
 0x256   :  { %p971_p13 = scmp.ne.s32.totalorder %s1241_s10, %s970_s16  ;;  %p974_p0 = scmp.lt.u32.totalorder %s970_s16, %s1241_s10 }
 0x258   :  { %p976_p1 = pnand %p974_p0, %p971_p13 }
 0x25a   :  { %979 = shalt.err (!%p976_p1)
}
 0x25b   :  { %612 = dma.vmem_to_hbm [thread:$0]  %s610_s24, 128, %s1241_s10, [#allocation4]  }
 0x25c   :  { %990 = dma.done.wait [#allocation4], 128  }
 0x25d   :  { %991 = vsyncadd [#allocation4], 4294967168 }
 0x25e   :  { %616 = vsyncpa [#allocation3], 1 }
 0x25f   :  { %617 = vsyncpa [#allocation6], 1 }
 0x260   :  { %618 = vsyncpa [#allocation9], 1 }
 0x261   :  { %619 = vsyncpa [#allocation12], 1 }
 0x262   :  { %620 = vsyncpa [#allocation15], 1 }
 0x263   :  { %621 = vsyncpa [#allocation4], 1 }

</bundles_post_ra>
